<compile_context>
chip_gen: v7x
topology: tpu7x:2x2x1
jax: 0.10.0
libtpu: 0.0.40
codegen_flags: <defaults>
</compile_context>

<pallas_src>
import functools

import jax
import jax.numpy as jnp
from jax.experimental import pallas as pl
from jax.experimental.pallas import tpu as pltpu


def residual_concat_kernel(x_ref, w_ref, b_ref, o_ref, *, use_mxu,
                           matmul_in_bf16):
    x = x_ref[0]                                   # (C, t_hw): channels x spatial
    if use_mxu:
        lhs = w_ref[...]                           # (C_out, C_in)
        rhs = x                                    # (C_in, t_hw)
        if matmul_in_bf16:
            # v5e has no native f32 MXU path; bf16 operands keep it mem-bound.
            lhs = lhs.astype(jnp.bfloat16)
            rhs = rhs.astype(jnp.bfloat16)
        y = jnp.dot(lhs, rhs, preferred_element_type=jnp.float32)
    else:
        # Tiny-C path: projection as C lane-broadcast FMAs on the VPU.
        C = x.shape[0]
        w = w_ref[...].astype(jnp.float32)
        xf = x.astype(jnp.float32)
        y = w[:, 0:1] * xf[0:1, :]
        for c_in in range(1, C):                   # static unroll, C is tiny here
            y = y + w[:, c_in:c_in + 1] * xf[c_in:c_in + 1, :]
    y = y + b_ref[...].astype(jnp.float32)         # (C, 1) broadcast over lanes
    # ResidualConcat: [fn(x), x].  Each half lands in its own (C, t_hw) slab,
    # so both stores start at sublane offset 0 (unmasked vst for any C).
    o_ref[0, 0] = y.astype(o_ref.dtype)
    o_ref[0, 1] = x


def _choose_spatial_tile(hw, n, c, itemsize, vmem_capacity):
    """Lane-aligned spatial tile: 512-lane floor, ~1-2 MiB block cap, and a
    cap that keeps the grid >= ~8 total steps for pipelining / megacore."""
    if hw <= 512:
        return hw                        # full extent (block dim == array dim)
    budget = min(2 << 20, max(512 * 1024, vmem_capacity // 16))
    max_t = (budget // (3 * c * itemsize) // 128) * 128      # in + out block
    depth_cap = ((hw * n) // 8 // 128) * 128                 # >= ~8 grid steps
    t = min(max_t, depth_cap, (hw // 128) * 128)
    t = max(t, 512)                      # roofline floor from measured sweeps
    return t                             # multiple of 128; cdiv grid handles edge


def residual_concat(x_nchw, w, b, *, matmul_in_bf16=False):
    """x_nchw: (N, C, H, W); w: (C_out=C, C_in=C); b: (C,)."""
    N, C, H, W = x_nchw.shape
    HW = H * W
    dtype = x_nchw.dtype
    itemsize = jnp.dtype(dtype).itemsize

    try:
        vmem_capacity = int(pltpu.get_tpu_info().vmem_capacity_bytes)
    except Exception:
        vmem_capacity = 64 << 20         # v7x floor; conservative on v5e/v6e

    # Free row-major views: NCHW -> (N, C, H*W); params in the input dtype.
    # (Feed bf16 x/w/b here to halve HBM traffic if the model tolerates it.)
    x3 = x_nchw.reshape(N, C, HW)
    b2 = b.reshape(C, 1).astype(dtype)
    w = w.astype(dtype)

    t_hw = _choose_spatial_tile(HW, N, C, itemsize, vmem_capacity)
    grid = (N, pl.cdiv(HW, t_hw))

    # MXU only pays off once C fills at least one sublane tile; below that the
    # VPU FMA path avoids MXU push/pop latency and dead sublanes.
    sublane_tile = 8 if itemsize >= 4 else 16
    use_mxu = C >= sublane_tile

    # VMEM: double-buffered activation blocks + resident params + headroom,
    # capped at half the per-core capacity (generation-aware).
    block_bytes = 2 * (C * t_hw + 2 * C * t_hw) * itemsize
    param_bytes = (C * C + C) * itemsize
    vmem_limit = int(min(max(block_bytes + param_bytes + (2 << 20), 16 << 20),
                         vmem_capacity // 2))

    kernel = functools.partial(residual_concat_kernel, use_mxu=use_mxu,
                               matmul_in_bf16=matmul_in_bf16)

    out4 = pl.pallas_call(
        kernel,
        out_shape=jax.ShapeDtypeStruct((N, 2, C, HW), dtype),
        grid_spec=pltpu.PrefetchScalarGridSpec(
            num_scalar_prefetch=0,
            grid=grid,
            in_specs=[
                pl.BlockSpec((1, C, t_hw), lambda n, j: (n, 0, j)),    # x tile
                pl.BlockSpec((C, C), lambda n, j: (0, 0),              # weight
                             pipeline_mode=pl.Buffered(1)),
                pl.BlockSpec((C, 1), lambda n, j: (0, 0),              # bias
                             pipeline_mode=pl.Buffered(1)),
            ],
            out_specs=pl.BlockSpec((1, 2, C, t_hw), lambda n, j: (n, 0, 0, j)),
        ),
        compiler_params=pltpu.CompilerParams(
            dimension_semantics=("parallel", "parallel"),
            vmem_limit_bytes=vmem_limit,
        ),
    )(x3, w, b2)

    # Row-major merge/split: (N, 2, C, H*W) -> (N, 2C, H, W).
    return out4.reshape(N, 2 * C, H, W)


if __name__ == "__main__":
    N, C, H, W = 2, 4, 16, 16

    key = jax.random.PRNGKey(0)
    kx, kw, kb = jax.random.split(key, 3)
    # f32 to match PyTorch defaults; bf16 inputs halve HBM traffic if allowed.
    x = jax.random.normal(kx, (N, C, H, W), dtype=jnp.float32)
    # deterministic synthetic parameters for fn = Conv2d(C, C, kernel_size=1)
    w = jax.random.normal(kw, (C, C), dtype=jnp.float32) * 0.1
    b = jax.random.normal(kb, (C,), dtype=jnp.float32) * 0.1

    out = residual_concat(x, w, b)
    out = jax.block_until_ready(out)

    # pure-JAX reference (NCHW semantics)
    y_ref = jnp.einsum("nchw,oc->nohw", x, w) + b[None, :, None, None]
    ref = jnp.concatenate([y_ref, x], axis=1)

    assert out.shape == (N, 2 * C, H, W)
    assert jnp.allclose(out, ref, atol=1e-5, rtol=1e-5)
    print("KERNEL_OK")
</pallas_src>

<mosaic_0001>
module attributes {stable_mosaic.version = 11 : i64} {
  func.func @residual_concat_kernel(%arg0: i32, %arg1: i32, %arg2: memref<1x4x256xf32, #tpu.memory_space<vmem>>, %arg3: memref<4x4xf32, #tpu.memory_space<vmem>>, %arg4: memref<4x1xf32, #tpu.memory_space<vmem>>, %arg5: memref<1x2x4x256xf32, #tpu.memory_space<vmem>>) attributes {dimension_semantics = [#tpu.dimension_semantics<parallel>, #tpu.dimension_semantics<parallel>], iteration_bounds = array<i64: 2, 1>, scalar_prefetch = 0 : i64, scratch_operands = 0 : i64, tpu.core_type = #tpu.core_type<tc>, window_params = [{transform_indices = @transform_0, window_bounds = array<i64: 1, 4, 256>}, {pipeline_mode = #tpu.pipeline_mode<synchronous>, transform_indices = @transform_1, window_bounds = array<i64: 4, 4>}, {pipeline_mode = #tpu.pipeline_mode<synchronous>, transform_indices = @transform_2, window_bounds = array<i64: 4, 1>}, {transform_indices = @transform_3, window_bounds = array<i64: 1, 2, 4, 256>}]} {
    %c0 = arith.constant 0 : index
    %c0_0 = arith.constant 0 : index
    %c0_1 = arith.constant 0 : index
    %0 = vector.load %arg2[%c0, %c0_0, %c0_1] : memref<1x4x256xf32, #tpu.memory_space<vmem>>, vector<1x4x256xf32>
    %1 = vector.shape_cast %0 : vector<1x4x256xf32> to vector<4x256xf32>
    %c0_2 = arith.constant 0 : index
    %c0_3 = arith.constant 0 : index
    %2 = vector.load %arg3[%c0_2, %c0_3] : memref<4x4xf32, #tpu.memory_space<vmem>>, vector<4x4xf32>
    %3 = vector.extract_strided_slice %2 {offsets = [0, 0], sizes = [4, 1], strides = [1, 1]} : vector<4x4xf32> to vector<4x1xf32>
    %4 = vector.extract_strided_slice %1 {offsets = [0, 0], sizes = [1, 256], strides = [1, 1]} : vector<4x256xf32> to vector<1x256xf32>
    %5 = vector.broadcast %3 : vector<4x1xf32> to vector<4x256xf32>
    %6 = vector.broadcast %4 : vector<1x256xf32> to vector<4x256xf32>
    %7 = arith.mulf %5, %6 : vector<4x256xf32>
    %8 = vector.extract_strided_slice %2 {offsets = [0, 1], sizes = [4, 1], strides = [1, 1]} : vector<4x4xf32> to vector<4x1xf32>
    %9 = vector.extract_strided_slice %1 {offsets = [1, 0], sizes = [1, 256], strides = [1, 1]} : vector<4x256xf32> to vector<1x256xf32>
    %10 = vector.broadcast %8 : vector<4x1xf32> to vector<4x256xf32>
    %11 = vector.broadcast %9 : vector<1x256xf32> to vector<4x256xf32>
    %12 = arith.mulf %10, %11 : vector<4x256xf32>
    %13 = arith.addf %7, %12 : vector<4x256xf32>
    %14 = vector.extract_strided_slice %2 {offsets = [0, 2], sizes = [4, 1], strides = [1, 1]} : vector<4x4xf32> to vector<4x1xf32>
    %15 = vector.extract_strided_slice %1 {offsets = [2, 0], sizes = [1, 256], strides = [1, 1]} : vector<4x256xf32> to vector<1x256xf32>
    %16 = vector.broadcast %14 : vector<4x1xf32> to vector<4x256xf32>
    %17 = vector.broadcast %15 : vector<1x256xf32> to vector<4x256xf32>
    %18 = arith.mulf %16, %17 : vector<4x256xf32>
    %19 = arith.addf %13, %18 : vector<4x256xf32>
    %20 = vector.extract_strided_slice %2 {offsets = [0, 3], sizes = [4, 1], strides = [1, 1]} : vector<4x4xf32> to vector<4x1xf32>
    %21 = vector.extract_strided_slice %1 {offsets = [3, 0], sizes = [1, 256], strides = [1, 1]} : vector<4x256xf32> to vector<1x256xf32>
    %22 = vector.broadcast %20 : vector<4x1xf32> to vector<4x256xf32>
    %23 = vector.broadcast %21 : vector<1x256xf32> to vector<4x256xf32>
    %24 = arith.mulf %22, %23 : vector<4x256xf32>
    %25 = arith.addf %19, %24 : vector<4x256xf32>
    %c0_4 = arith.constant 0 : index
    %c0_5 = arith.constant 0 : index
    %26 = vector.load %arg4[%c0_4, %c0_5] : memref<4x1xf32, #tpu.memory_space<vmem>>, vector<4x1xf32>
    %27 = vector.broadcast %26 : vector<4x1xf32> to vector<4x256xf32>
    %28 = arith.addf %25, %27 : vector<4x256xf32>
    %c0_6 = arith.constant 0 : index
    %c0_7 = arith.constant 0 : index
    %c0_8 = arith.constant 0 : index
    %c0_9 = arith.constant 0 : index
    %29 = vector.load %arg5[%c0_6, %c0_7, %c0_8, %c0_9] : memref<1x2x4x256xf32, #tpu.memory_space<vmem>>, vector<1x1x4x256xf32>
    %30 = vector.shape_cast %29 : vector<1x1x4x256xf32> to vector<4x256xf32>
    %31 = vector.shape_cast %28 : vector<4x256xf32> to vector<1x1x4x256xf32>
    tpu.vector_store %arg5[%c0_6, %c0_7, %c0_8, %c0_9], %31 {strides = array<i32>} : memref<1x2x4x256xf32, #tpu.memory_space<vmem>>, vector<1x1x4x256xf32>,
    %c0_10 = arith.constant 0 : index
    %c1 = arith.constant 1 : index
    %c0_11 = arith.constant 0 : index
    %c0_12 = arith.constant 0 : index
    %32 = vector.load %arg5[%c0_10, %c1, %c0_11, %c0_12] : memref<1x2x4x256xf32, #tpu.memory_space<vmem>>, vector<1x1x4x256xf32>
    %33 = vector.shape_cast %32 : vector<1x1x4x256xf32> to vector<4x256xf32>
    %34 = vector.shape_cast %1 : vector<4x256xf32> to vector<1x1x4x256xf32>
    tpu.vector_store %arg5[%c0_10, %c1, %c0_11, %c0_12], %34 {strides = array<i32>} : memref<1x2x4x256xf32, #tpu.memory_space<vmem>>, vector<1x1x4x256xf32>,
    return
  }
  func.func @transform_0(%arg0: i32, %arg1: i32) -> (i32, i32, i32) {
    %c0_i32 = arith.constant 0 : i32
    %c0_i32_0 = arith.constant 0 : i32
    return %arg0, %c0_i32, %arg1 : i32, i32, i32
  }
  func.func @transform_1(%arg0: i32, %arg1: i32) -> (i32, i32) {
    %c0_i32 = arith.constant 0 : i32
    %c0_i32_0 = arith.constant 0 : i32
    %c0_i32_1 = arith.constant 0 : i32
    return %c0_i32, %c0_i32_0 : i32, i32
  }
  func.func @transform_2(%arg0: i32, %arg1: i32) -> (i32, i32) {
    %c0_i32 = arith.constant 0 : i32
    %c0_i32_0 = arith.constant 0 : i32
    %c0_i32_1 = arith.constant 0 : i32
    return %c0_i32, %c0_i32_0 : i32, i32
  }
  func.func @transform_3(%arg0: i32, %arg1: i32) -> (i32, i32, i32, i32) {
    %c0_i32 = arith.constant 0 : i32
    %c0_i32_0 = arith.constant 0 : i32
    %c0_i32_1 = arith.constant 0 : i32
    return %arg0, %c0_i32, %c0_i32_0, %arg1 : i32, i32, i32, i32
  }
}

</mosaic_0001>

<bundles_post_ra>
// kernel: tpu_custom_call.1
= control target key start
LH: loop header
LB: loop body
LE: loop exit
PB: predicated region body
PF: predicated region fallthrough
CT: control target
= control target key end

     0   :  { %8 = vsyncpa [#allocation3], 0  ;;  %s851_s0 = inlined_call_operand.hbm [shape: f32[2,4,256], index: 0, kind: input, shape index: {}]   ;;  %s852_s1 = inlined_call_operand.vmem [shape: f32[4,4], index: 1, kind: input, shape index: {}]   ;;  %s853_s2 = inlined_call_operand.vmem [shape: f32[4,1], index: 2, kind: input, shape index: {}]   ;;  %s854_s3 = inlined_call_operand.hbm [shape: f32[2,2,4,256], index: 3, kind: output, shape index: {}]  }
   0x1   :  { %10 = vsyncpa [#allocation3 + $0x1], 0 }
   0x2   :  { %11 = vsyncpa [#allocation4], 0 }
   0x3   :  { %13 = vsyncpa [#allocation4 + $0x1], 0  ;;  %s665_s12 = smov 0   ;;  %s667_s13 = smov 0  }
   0x4   :  { %s669_s14 = smov 0   ;;  %s671_s15 = smov 0  }
   0x5   :  { %s673_s16 = smov 0   ;;  %s675_s17 = smov 0  }
   0x6 LB: > { %s431_s18 = sadd.s32 4294967295, %s635_s17   ;;  %s432_s19 = sadd.s32 4294967294, %s635_s17   ;;  %s635_s17 = sphi %s675_s17, %s19_s17   ;;  %s631_s16 = sphi %s673_s16, %s870_s16   ;;  %s627_s15 = sphi %s671_s15, %s869_s15   ;;  %s623_s14 = sphi %s669_s14, %s868_s14   ;;  %s619_s13 = sphi %s667_s13, %s867_s13   ;;  %s615_s12 = sphi %s665_s12, %s866_s12  }
   0x7   : > { %s31_s20 = sadd.s32 1, %s631_s16  ;;  %s40_s21 = sadd.s32 1, %s623_s14 }
   0x8   : > { %p33_p0 = scmp.ge.s32.totalorder %s31_s20, 2  ;;  %p47_p1 = scmp.ne.s32.totalorder %s623_s14, %s619_s13 }
   0x9   : > { %p48_p2 = scmp.eq.s32.totalorder %s635_s17, 0  ;;  %p53_p3 = scmp.ne.s32.totalorder %s619_s13, %s615_s12 }
   0xa   : > { %s872_s20 = smov (%p33_p0, %s31_s20), 0  ;;  %p54_p5 = scmp.eq.s32.totalorder %s431_s18, 0 }
   0xb   : > { %p706_p4 = por %p48_p2, %p47_p1  ;;  %s35_s23 = ssub.s32 %s631_s16, %s872_s20 }
   0xc   : > { %p121_p6 = scmp.eq.s32.totalorder %s431_s18, 1  ;;  %p38_p7 = scmp.eq.s32.totalorder %s35_s23, 0 }
   0xd   : > { %p712_p8 = por %p54_p5, %p53_p3  ;;  %p127_p10 = scmp.eq.s32.totalorder %s432_s19, 1 }
   0xe   : > { %p716_p9 = por %p121_p6, %p47_p1  ;;  %p461_p13 = scmp.lt.s32.totalorder %s635_s17, 2 }
   0xf   : > { %s721_s26 = scalar_select %p38_p7, %s623_s14, %s40_s21  }
  0x10   : > { %s858_s25 = scalar_select %p716_p9, 1, 0 }
  0x11   : > { %p723_p11 = por %p127_p10, %p53_p3  ;;  %s153_s28 = sand.u32 1, %s623_s14  }
  0x12   : > { %s435_s29 = sshll.u32 %s153_s28, 3  ;;  %s447_s30 = sshll.u32 %s631_s16, 7 }
  0x13   : > { %s859_s27 = scalar_select %p723_p11, 1, 0 }
  0x14   : > { %s734_s6 = scalar_lea.hbm %s851_s0, %s447_s30  ;;  %s157_s7 = scalar_lea.vmem [#allocation2], %s435_s29 }
  0x15   : > { %s167_s8 = sshll.u32 %s157_s7, 4  ;;  %p740_p0 = pnand %p461_p13, %p706_p4  ;;  %s736_s8 = int_to_ptr.vmem [resolvable:$true] %s167_s8 }
  0x16   : > { %s154_s10 = scalar_lea.sflag [#allocation3], %s153_s28  ;;  %s523_s11 = scalar_lea.hbm %s734_s6, 128 }
  0x17   : > { %p524_p3 = scmp.ne.s32.totalorder %s734_s6, %s523_s11  ;;  %p525_p5 = pneg %p740_p0 }
  0x18   : > { %s528_s21 = scalar_lea.hbm %s851_s0, 256  ;;  %p529_p4 = scmp.lt.u32.totalorder %s734_s6, %s851_s0 }
  0x19   : > { %p526_p6 = pnand %p525_p5, %p524_p3  ;;  %p530_p10 = scmp.lt.u32.totalorder %s528_s21, %s523_s11 }
  0x1a   : > { %p532_p12 = scmp.lt.u32.totalorder %s523_s11, %s734_s6 }
  0x1b   : > { %p527_p7 = pneg %p526_p6  ;;  %p531_p13 = por %p530_p10, %p529_p4 }
  0x1d   : > { %p533_p1 = por %p532_p12, %p531_p13 }
  0x1f   : > { %p534_p2 = pnand %p533_p1, %p527_p7 }
  0x21   : > { %537 = shalt.err (!%p534_p2)
}
  0x22   : > { %s538_s28 = scalar_lea.vmem %s736_s8, 128  ;;  %s637_s29 = smov [#allocation2]  }
  0x23   : > { %p539_p3 = scmp.ne.s32.totalorder %s736_s8, %s538_s28  ;;  %s543_s30 = sshll.u32 %s637_s29, 4  ;;  %s544_s30 = int_to_ptr.vmem [resolvable:$false] %s543_s30 }
  0x24   : > { %s545_s4 = scalar_lea.vmem %s544_s30, 256  ;;  %p546_p9 = scmp.lt.s32.totalorder %s736_s8, %s544_s30 }
  0x25   : > { %p541_p6 = pnand %p539_p3, %p525_p5  ;;  %p547_p4 = scmp.lt.s32.totalorder %s545_s4, %s538_s28 }
  0x27   : > { %p542_p11 = pneg %p541_p6  ;;  %p548_p10 = por %p547_p4, %p546_p9 }
  0x29   : > { %p549_p12 = pnand %p548_p10, %p542_p11 }
  0x2b   : > { %552 = shalt.err (!%p549_p12)
}
  0x2c   : > { %456 = dma.hbm_to_vmem [thread:$0]  (!%p740_p0), %s734_s6, 128, %s736_s8, %s154_s10  }
  0x2d   : > { %p861_p1 = scmp.lt.s32.totalorder %s635_s17, 3  ;;  %p862_p2 = scmp.ge.s32.totalorder %s635_s17, 1 }
  0x2f   : > { %p173_p5 = pnand %p862_p2, %p861_p1 }
  0x30   : > { %s776_s5 = sand.u32 (!%p173_p5), 1, %s619_s13  }
  0x31   : > { %176 = sbr.rel (%p173_p5) target bundleno = 219 (0xdb), region = 32  ;;  %s439_s7 = sshll.u32 (!%p173_p5), %s776_s5, 3 }
  0x32   : > { %s179_s11 = scalar_lea.sflag (!%p173_p5), [#allocation3], %s776_s5  ;;  %s182_s18 = scalar_lea.vmem (!%p173_p5), [#allocation2], %s439_s7 }
  0x38   : > { %606 = dma.done.wait (%p712_p8), %s179_s11, 128  }
  0x39   : > { %608 = vsyncadd (%p712_p8), %s179_s11, 4294967168  ;;  %v638_v0 = vmov 0   ;;  %v639_v1 = vmov 2   ;;  %s440_s6 = sshll.u32 %s776_s5, 4  ;;  %v207_v2 = vld [vmem:[%s182_s18] sm:$0xff]  ;;  %v640_v4 = vmov 1   ;;  %v215_v7 = vlaneseq }
  0x3a   : > { %517 = vset.pattern.permute.xlu0 %v638_v0  ;;  %519 = vset.pattern.permute.xlu1 %v639_v1  ;;  %v208_v3 = vld [vmem:[%s852_s1] sm:$0xf]  ;;  %s788_s10 = scalar_lea.vmem [#allocation5], %s440_s6  ;;  %v641_v5 = vmov 3   ;;  %s448_s22 = sshll.u32 %s627_s15, 8 }
  0x3b   : > { %441 = vst [vmem:[%s788_s10 + $0x8] sm:$0xff] %v207_v2  ;;  %211 = vperm.xlu0 %517, %v208_v3   ;;  %262 = vperm.xlu1 %519, %v208_v3   ;;  %v313_v6 = vld [vmem:[%s853_s2] sm:$0xf]  ;;  %v216_v8 = vshrl.u32 %v215_v7, 7  ;;  %s344_s21 = sshll.u32 %s788_s10, 4  ;;  %s801_s29 = scalar_lea.hbm %s854_s3, %s448_s22  ;;  %s796_s21 = int_to_ptr.vmem [resolvable:$true] %s344_s21 }
  0x3c   : > { %s329_s30 = scalar_lea.sflag [#allocation4], %s776_s5  ;;  %s553_s4 = scalar_lea.vmem %s796_s21, 256 }
  0x3d   : > { %v217_v9 = vsub.s32 0, %v216_v8  ;;  %v221_v10 = vsub.s32 4, %v216_v8  ;;  %v241_v11 = vsub.s32 1, %v216_v8  ;;  %v245_v12 = vsub.s32 5, %v216_v8  ;;  %p554_p8 = scmp.ne.s32.totalorder %s796_s21, %s553_s4  ;;  %p863_p9 = scmp.ne.s32.totalorder %s858_s25, 0 }
  0x3e   : > { %v267_v13 = vsub.s32 2, %v216_v8  ;;  %v271_v14 = vsub.s32 6, %v216_v8  ;;  %v293_v15 = vsub.s32 3, %v216_v8  ;;  %v297_v16 = vsub.s32 7, %v216_v8  ;;  %s642_s15 = smov [#allocation5]  }
  0x3f   : > { %518 = vset.pattern.permute.xlu0 %v640_v4  ;;  %520 = vset.pattern.permute.xlu1 %v641_v5  ;;  %v218_v17 = vrot.slane %v207_v2, %v217_v9  ;;  %v222_v18 = vrot.slane %v207_v2, %v221_v10  ;;  %v242_v19 = vrot.slane %v207_v2, %v241_v11  ;;  %p555_p11 = pnand %p554_p8, %p863_p9  ;;  %s557_s7 = sshll.u32 %s642_s15, 4  ;;  %s558_s7 = int_to_ptr.vmem [resolvable:$false] %s557_s7 }
  0x40   : > { %236 = vperm.xlu0 %518, %v208_v3   ;;  %288 = vperm.xlu1 %520, %v208_v3   ;;  %v246_v20 = vrot.slane %v207_v2, %v245_v12  ;;  %v268_v21 = vrot.slane %v207_v2, %v267_v13  ;;  %v272_v22 = vrot.slane %v207_v2, %v271_v14  ;;  %s559_s11 = scalar_lea.vmem %s558_s7, 512  ;;  %p560_p7 = scmp.lt.s32.totalorder %s796_s21, %s558_s7 }
  0x41   : > { %v294_v25 = vrot.slane %v207_v2, %v293_v15  ;;  %v298_v26 = vrot.slane %v207_v2, %v297_v16  ;;  %v228_v27 = vrot.slane %v218_v17, %v217_v9  ;;  %v232_v28 = vrot.slane %v222_v18, %v217_v9  ;;  %p556_p0 = pneg %p555_p11  ;;  %p561_p13 = scmp.lt.s32.totalorder %s559_s11, %s553_s4 }
  0x42   : > { %v252_v29 = vrot.slane %v242_v19, %v241_v11  ;;  %v256_v30 = vrot.slane %v246_v20, %v241_v11  ;;  %v278_v31 = vrot.slane %v268_v21, %v267_v13  ;;  %v282_v32 = vrot.slane %v272_v22, %v267_v13 }
  0x43   : > { %v304_v33 = vrot.slane %v294_v25, %v293_v15  ;;  %v308_v34 = vrot.slane %v298_v26, %v293_v15  ;;  %p562_p3 = por %p561_p13, %p560_p7 }
  0x44   : > { %521 = vset.pattern.permute.xlu1 %v638_v0  ;;  %522 = vset.pattern.permute.xlu0 %v638_v0 }
  0x45   : > { %316 = vperm.xlu1 %521, %v313_v6   ;;  %p563_p6 = pnand %p562_p3, %p556_p0 }
  0xba   : > { %v212_v23 = vpop.permute.xlu0 %211  ;;  %v263_v24 = vpop.permute.xlu1 %262 }
  0xbb   : > { %v233_v37 = vmul.f32 %v228_v27, %v212_v23  ;;  %v234_v38 = vmul.f32 %v232_v28, %v212_v23  ;;  %v283_v41 = vmul.f32 %v278_v31, %v263_v24  ;;  %v284_v42 = vmul.f32 %v282_v32, %v263_v24 }
  0xbf   : > { %v237_v35 = vpop.permute.xlu0 %236  ;;  %v289_v36 = vpop.permute.xlu1 %288 }
  0xc0   : > { %v257_v39 = vmul.f32 %v252_v29, %v237_v35  ;;  %v258_v40 = vmul.f32 %v256_v30, %v237_v35  ;;  %v309_v45 = vmul.f32 %v304_v33, %v289_v36  ;;  %v310_v46 = vmul.f32 %v308_v34, %v289_v36 }
  0xc2   : > { %v259_v43 = vadd.f32 %v257_v39, %v233_v37  ;;  %v260_v44 = vadd.f32 %v258_v40, %v234_v38 }
  0xc4   : > { %v285_v47 = vadd.f32 %v283_v41, %v259_v43  ;;  %v286_v48 = vadd.f32 %v284_v42, %v260_v44  ;;  %v317_v49 = vpop.permute.xlu1 %316 }
  0xc6   : > { %v311_v50 = vadd.f32 %v309_v45, %v285_v47  ;;  %v312_v51 = vadd.f32 %v310_v46, %v286_v48 }
  0xc8   : > { %v319_v52 = vadd.f32 %v317_v49, %v311_v50  ;;  %v320_v53 = vadd.f32 %v317_v49, %v312_v51 }
  0xca   : > { %v323_v54 = vcombine.low %v319_v52, %v320_v53 }
  0xcc   : > { %325 = vst [vmem:[%s788_s10] sm:$0xff] %v323_v54 }
  0xcd   : > { %566 = shalt.err (!%p563_p6)
}
  0xce   : > { %s567_s18 = scalar_lea.hbm %s801_s29, 256  ;;  %s571_s9 = scalar_lea.hbm %s854_s3, 512 }
  0xcf   : > { %p568_p4 = scmp.ne.s32.totalorder %s801_s29, %s567_s18  ;;  %p572_p1 = scmp.lt.u32.totalorder %s801_s29, %s854_s3 }
  0xd0   : > { %p573_p2 = scmp.lt.u32.totalorder %s571_s9, %s567_s18  ;;  %p575_p8 = scmp.lt.u32.totalorder %s567_s18, %s801_s29 }
  0xd1   : > { %p569_p10 = pnand %p568_p4, %p863_p9 }
  0xd2   : > { %p574_p5 = por %p573_p2, %p572_p1 }
  0xd3   : > { %p570_p12 = pneg %p569_p10 }
  0xd4   : > { %p576_p11 = por %p575_p8, %p574_p5 }
  0xd6   : > { %p577_p0 = pnand %p576_p11, %p570_p12 }
  0xd8   : > { %580 = shalt.err (!%p577_p0)
}
  0xd9   : > { %s643_s19 = smov 128   ;;  %s644_s22 = smov 8  }
  0xda   : > { %451 = dma.vmem_to_hbm [thread:$0]  (%p863_p9), %s796_s21, 256, %s801_s29, %s329_s30, %s643_s19, %s643_s19, %s644_s22  }
  0xdb PF: > { %s359_s23 = sand.u32 1, %s615_s12   ;;  %p864_p7 = scmp.ne.s32.totalorder %s859_s27, 0 }
  0xdc   : > { %p865_p13 = scmp.ge.s32.totalorder %s635_s17, 2  ;;  %s360_s28 = scalar_lea.sflag [#allocation4], %s359_s23 }
  0xde   : > { %p458_p3 = pnand %p865_p13, %p864_p7 }
  0xe0   : > { %610 = dma.done.wait (!%p458_p3), %s360_s28, 256  }
  0xe1   : > { %612 = vsyncadd (!%p458_p3), %s360_s28, 4294967040  ;;  %s19_s17 = sadd.s32 1, %s635_s17   ;;  %s866_s12 = smov %s619_s13 }
  0xe2   : > { %p16_p6 = scmp.ge.s32.totalorder %s19_s17, 4   ;;  %s867_s13 = smov %s623_s14 }
  0xe3   : > { %s868_s14 = smov %s721_s26  ;;  %s869_s15 = smov %s631_s16 }
  0xe4   : > { %s870_s16 = smov %s872_s20  ;;  %18 = sbr.rel (!%p16_p6) target bundleno = 6 (0x6), region = 78 }
  0xeb   :  { %365 = vsyncpa [#allocation3], 1 }
  0xec   :  { %367 = vsyncpa [#allocation3 + $0x1], 1 }
  0xed   :  { %368 = vsyncpa [#allocation4], 1 }
  0xee   :  { %370 = vsyncpa [#allocation4 + $0x1], 1 }

</bundles_post_ra>
